<compile_context>
chip_gen: v7x
topology: tpu7x:2x2x1
jax: 0.10.0
libtpu: 0.0.40
codegen_flags: <defaults>
</compile_context>

<pallas_src>
import jax
import jax.numpy as jnp
from jax.experimental import pallas as pl
from jax.experimental.pallas import tpu as pltpu


NEG_SLOPE = 0.01  # nn.LeakyReLU() default negative_slope


def _round_up(n, m):
    return ((n + m - 1) // m) * m


def mlp2_kernel(x_ref, w1_ref, b1_ref, w2_ref, b2_ref, o_ref):
    """Fused forward for one batch tile: out = leaky_relu(x @ W1 + b1) @ W2 + b2.

    x_ref  : (TILE_B, IN_F)  f32   (cast to bf16 here, on the VPU)
    w1_ref : (IN_F, HID_P)   bf16  (VMEM-resident across grid steps)
    b1_ref : (1, HID_P)      f32
    w2_ref : (HID_P, OUT_P)  bf16  (VMEM-resident across grid steps)
    b2_ref : (1, OUT_P)      f32
    o_ref  : (TILE_B, OUT_P) bf16
    """
    # Cast inside the kernel: f32 HBM read (4B/elem) instead of a host-side
    # pad+cast pass (4B read + 2B write + 2B re-read).
    x = x_ref[...].astype(jnp.bfloat16)

    # Layer 1: bf16 MXU matmul, f32 accumulation; bias + LeakyReLU in f32 (VPU).
    h = jnp.dot(x, w1_ref[...], preferred_element_type=jnp.float32)
    h = h + b1_ref[...]
    h = jnp.where(h > 0, h, NEG_SLOPE * h)

    # Layer 2: cast activations back to bf16 for the MXU, accumulate in f32.
    y = jnp.dot(h.astype(jnp.bfloat16), w2_ref[...],
                preferred_element_type=jnp.float32)
    y = y + b2_ref[...]

    o_ref[...] = y.astype(o_ref.dtype)


def prepare_params(w1, b1, w2, b2):
    """One-time weight prep (hoisted off the per-call path; cache the result).

    PyTorch nn.Linear layout in:
      w1 : (hidden_size1, input_size) f32, b1 : (hidden_size1,) f32
      w2 : (out_size, hidden_size1)   f32, b2 : (out_size,)     f32
    Returns (w1_p, b1_p, w2_p, b2_p, out_f) with weights transposed to
    (in, out), cast to bf16, and only the *output* feature dims lane-padded
    to multiples of 128 (K dims are left unpadded to match unpadded x).
    """
    hid, in_f = w1.shape
    out_f = w2.shape[0]
    hid_p = _round_up(hid, 128)
    out_p = _round_up(out_f, 128)

    w1_p = jnp.zeros((in_f, hid_p), jnp.bfloat16).at[:, :hid].set(
        w1.T.astype(jnp.bfloat16))
    b1_p = jnp.zeros((1, hid_p), jnp.float32).at[0, :hid].set(b1)
    w2_p = jnp.zeros((hid_p, out_p), jnp.bfloat16).at[:hid, :out_f].set(
        w2.T.astype(jnp.bfloat16))
    b2_p = jnp.zeros((1, out_p), jnp.float32).at[0, :out_f].set(b2)
    return w1_p, b1_p, w2_p, b2_p, out_f


def _choose_batch_tile(B, tile_b):
    """Adaptive batch tile: minimize end-of-batch padding, keep >=2 grid tiles
    when B >= 16 (so both v7x TensorCores are fed), round to 256-multiples for
    large tiles (v6e/v7x MXU fill)."""
    n_chunks = max(pl.cdiv(B, tile_b), min(2, pl.cdiv(B, 8)))
    tb = _round_up(pl.cdiv(B, n_chunks), 8)
    if tb >= 256:
        tb = _round_up(tb, 256)
    return tb


def dnn_model1_forward(x, prepped_params, *, tile_b=1024, out_dtype=jnp.bfloat16):
    """Forward pass of DNNModel1 with pre-prepared (padded bf16) weights.

    x : (B, input_size) f32
    returns (B, out_size) in `out_dtype` (bf16 by default to halve the output
    HBM stream; pass jnp.float32 if full-precision output is required).
    """
    w1_p, b1_p, w2_p, b2_p, out_f = prepped_params
    B, in_f = x.shape
    assert w1_p.shape[0] == in_f
    hid_p = w1_p.shape[1]
    out_p = w2_p.shape[1]

    tb = _choose_batch_tile(B, tile_b)
    b_p = _round_up(B, tb)
    num_tiles = b_p // tb

    # Pad the batch dim only when needed; never pad/cast the feature dim of x.
    x_in = x if b_p == B else jnp.pad(x, ((0, b_p - B), (0, 0)))

    out_bytes = jnp.dtype(out_dtype).itemsize
    flops = 2 * b_p * (in_f * hid_p + hid_p * out_p)
    bytes_accessed = (
        x_in.size * 4 + w1_p.size * 2 + w2_p.size * 2
        + b1_p.size * 4 + b2_p.size * 4 + b_p * out_p * out_bytes)

    out_padded = pl.pallas_call(
        mlp2_kernel,
        out_shape=jax.ShapeDtypeStruct((b_p, out_p), out_dtype),
        grid=(num_tiles,),
        in_specs=[
            # Activations: tiled along batch, pipelined/double-buffered.
            # Last dim == full array dim (in_f), so no 128-divisibility needed.
            pl.BlockSpec((tb, in_f), lambda i: (i, 0)),
            # Weights / biases: constant index_map -> stay VMEM-resident.
            pl.BlockSpec((in_f, hid_p), lambda i: (0, 0)),
            pl.BlockSpec((1, hid_p), lambda i: (0, 0)),
            pl.BlockSpec((hid_p, out_p), lambda i: (0, 0)),
            pl.BlockSpec((1, out_p), lambda i: (0, 0)),
        ],
        # Lane-dense output block (out_p is a multiple of 128): unmasked vst.
        out_specs=pl.BlockSpec((tb, out_p), lambda i: (i, 0)),
        compiler_params=pltpu.CompilerParams(
            dimension_semantics=("parallel",)),
        cost_estimate=pl.CostEstimate(
            flops=flops, transcendentals=0, bytes_accessed=bytes_accessed),
    )(x_in, w1_p, b1_p, w2_p, b2_p)

    # Strip batch / lane padding outside the kernel.
    return out_padded[:B, :out_f]


def init_linear_params(key, in_features, out_features):
    """Deterministic PyTorch-like init: U(-1/sqrt(in), 1/sqrt(in)), PyTorch layout."""
    k_w, k_b = jax.random.split(key)
    bound = 1.0 / jnp.sqrt(jnp.float32(in_features))
    w = jax.random.uniform(k_w, (out_features, in_features), jnp.float32,
                           minval=-bound, maxval=bound)
    b = jax.random.uniform(k_b, (out_features,), jnp.float32,
                           minval=-bound, maxval=bound)
    return w, b


if __name__ == "__main__":
    # Small shapes consistent with DNNModel1(input_size, hidden_size1, out_size).
    batch = 8
    input_size, hidden_size1, out_size = 32, 64, 8

    key = jax.random.PRNGKey(0)
    k_x, k_l1, k_out = jax.random.split(key, 3)

    x = jax.random.normal(k_x, (batch, input_size), jnp.float32)
    w1, b1 = init_linear_params(k_l1, input_size, hidden_size1)
    w2, b2 = init_linear_params(k_out, hidden_size1, out_size)

    # One-time weight prep (hoisted out of the per-call path).
    prepped = prepare_params(w1, b1, w2, b2)
    prepped = jax.tree_util.tree_map(jax.block_until_ready, prepped)

    fwd = jax.jit(lambda xx: dnn_model1_forward(xx, prepped))
    out = jax.block_until_ready(fwd(x))
    assert out.shape == (batch, out_size)
    assert out.dtype == jnp.bfloat16

    # Reference with the same numerics (bf16 matmul inputs, f32 accumulation).
    xb = x.astype(jnp.bfloat16)
    h_ref = jnp.dot(xb, w1.T.astype(jnp.bfloat16),
                    preferred_element_type=jnp.float32) + b1
    h_ref = jnp.where(h_ref > 0, h_ref, NEG_SLOPE * h_ref)
    ref = jnp.dot(h_ref.astype(jnp.bfloat16), w2.T.astype(jnp.bfloat16),
                  preferred_element_type=jnp.float32) + b2

    # Output is bf16 -> compare with bf16-level tolerance.
    assert jnp.allclose(out.astype(jnp.float32), ref, atol=2e-2, rtol=2e-2), \
        "mismatch vs reference"

    print("KERNEL_OK")
</pallas_src>

<mosaic_0001>
module attributes {stable_mosaic.version = 11 : i64} {
  func.func @mlp2_kernel(%arg0: i32, %arg1: memref<8x32xf32, #tpu.memory_space<vmem>>, %arg2: memref<32x128xbf16, #tpu.memory_space<vmem>>, %arg3: memref<1x128xf32, #tpu.memory_space<vmem>>, %arg4: memref<128x128xbf16, #tpu.memory_space<vmem>>, %arg5: memref<1x128xf32, #tpu.memory_space<vmem>>, %arg6: memref<8x128xbf16, #tpu.memory_space<vmem>>) attributes {dimension_semantics = [#tpu.dimension_semantics<parallel>], iteration_bounds = array<i64: 1>, scalar_prefetch = 0 : i64, scratch_operands = 0 : i64, tpu.core_type = #tpu.core_type<tc>, window_params = [{transform_indices = @transform_0, window_bounds = array<i64: 8, 32>}, {pipeline_mode = #tpu.pipeline_mode<synchronous>, transform_indices = @transform_1, window_bounds = array<i64: 32, 128>}, {pipeline_mode = #tpu.pipeline_mode<synchronous>, transform_indices = @transform_2, window_bounds = array<i64: 1, 128>}, {pipeline_mode = #tpu.pipeline_mode<synchronous>, transform_indices = @transform_3, window_bounds = array<i64: 128, 128>}, {pipeline_mode = #tpu.pipeline_mode<synchronous>, transform_indices = @transform_4, window_bounds = array<i64: 1, 128>}, {transform_indices = @transform_5, window_bounds = array<i64: 8, 128>}]} {
    %c0 = arith.constant 0 : index
    %c0_0 = arith.constant 0 : index
    %0 = vector.load %arg1[%c0, %c0_0] : memref<8x32xf32, #tpu.memory_space<vmem>>, vector<8x32xf32>
    %1 = arith.truncf %0 : vector<8x32xf32> to vector<8x32xbf16>
    %c0_1 = arith.constant 0 : index
    %c0_2 = arith.constant 0 : index
    %2 = vector.load %arg2[%c0_1, %c0_2] : memref<32x128xbf16, #tpu.memory_space<vmem>>, vector<32x128xbf16>
    %cst = arith.constant dense<0.000000e+00> : vector<8x128xf32>
    %3 = tpu.matmul %1, %2, %cst {dimension_numbers = #tpu.dot_dimension_numbers<[1], [0], [0], [1], [0, 0, 1, 1], [], []>} : vector<8x32xbf16>, vector<32x128xbf16>, vector<8x128xf32> -> vector<8x128xf32>
    %c0_3 = arith.constant 0 : index
    %c0_4 = arith.constant 0 : index
    %4 = vector.load %arg3[%c0_3, %c0_4] : memref<1x128xf32, #tpu.memory_space<vmem>>, vector<1x128xf32>
    %5 = vector.broadcast %4 : vector<1x128xf32> to vector<8x128xf32>
    %6 = arith.addf %3, %5 : vector<8x128xf32>
    %cst_5 = arith.constant 0.000000e+00 : f32
    %7 = vector.broadcast %cst_5 : f32 to vector<8x128xf32>
    %8 = arith.cmpf ogt, %6, %7 : vector<8x128xf32>
    %cst_6 = arith.constant 0.00999999977 : f32
    %9 = vector.broadcast %cst_6 : f32 to vector<8x128xf32>
    %10 = arith.mulf %9, %6 : vector<8x128xf32>
    %11 = arith.select %8, %6, %10 : vector<8x128xi1>, vector<8x128xf32>
    %12 = arith.truncf %11 : vector<8x128xf32> to vector<8x128xbf16>
    %c0_7 = arith.constant 0 : index
    %c0_8 = arith.constant 0 : index
    %13 = vector.load %arg4[%c0_7, %c0_8] : memref<128x128xbf16, #tpu.memory_space<vmem>>, vector<128x128xbf16>
    %cst_9 = arith.constant dense<0.000000e+00> : vector<8x128xf32>
    %14 = tpu.matmul %12, %13, %cst_9 {dimension_numbers = #tpu.dot_dimension_numbers<[1], [0], [0], [1], [0, 0, 1, 1], [], []>} : vector<8x128xbf16>, vector<128x128xbf16>, vector<8x128xf32> -> vector<8x128xf32>
    %c0_10 = arith.constant 0 : index
    %c0_11 = arith.constant 0 : index
    %15 = vector.load %arg5[%c0_10, %c0_11] : memref<1x128xf32, #tpu.memory_space<vmem>>, vector<1x128xf32>
    %16 = vector.broadcast %15 : vector<1x128xf32> to vector<8x128xf32>
    %17 = arith.addf %14, %16 : vector<8x128xf32>
    %18 = arith.truncf %17 : vector<8x128xf32> to vector<8x128xbf16>
    %c0_12 = arith.constant 0 : index
    %c0_13 = arith.constant 0 : index
    %19 = vector.load %arg6[%c0_12, %c0_13] : memref<8x128xbf16, #tpu.memory_space<vmem>>, vector<8x128xbf16>
    tpu.vector_store %arg6[%c0_12, %c0_13], %18 {strides = array<i32>} : memref<8x128xbf16, #tpu.memory_space<vmem>>, vector<8x128xbf16>,
    return
  }
  func.func @transform_0(%arg0: i32) -> (i32, i32) {
    %c0_i32 = arith.constant 0 : i32
    %c0_i32_0 = arith.constant 0 : i32
    return %arg0, %c0_i32 : i32, i32
  }
  func.func @transform_1(%arg0: i32) -> (i32, i32) {
    %c0_i32 = arith.constant 0 : i32
    %c0_i32_0 = arith.constant 0 : i32
    %c0_i32_1 = arith.constant 0 : i32
    return %c0_i32, %c0_i32_0 : i32, i32
  }
  func.func @transform_2(%arg0: i32) -> (i32, i32) {
    %c0_i32 = arith.constant 0 : i32
    %c0_i32_0 = arith.constant 0 : i32
    %c0_i32_1 = arith.constant 0 : i32
    return %c0_i32, %c0_i32_0 : i32, i32
  }
  func.func @transform_3(%arg0: i32) -> (i32, i32) {
    %c0_i32 = arith.constant 0 : i32
    %c0_i32_0 = arith.constant 0 : i32
    %c0_i32_1 = arith.constant 0 : i32
    return %c0_i32, %c0_i32_0 : i32, i32
  }
  func.func @transform_4(%arg0: i32) -> (i32, i32) {
    %c0_i32 = arith.constant 0 : i32
    %c0_i32_0 = arith.constant 0 : i32
    %c0_i32_1 = arith.constant 0 : i32
    return %c0_i32, %c0_i32_0 : i32, i32
  }
  func.func @transform_5(%arg0: i32) -> (i32, i32) {
    %c0_i32 = arith.constant 0 : i32
    %c0_i32_0 = arith.constant 0 : i32
    return %arg0, %c0_i32 : i32, i32
  }
}

</mosaic_0001>

<bundles_post_ra>
// kernel: _lambda_.1
= control target key start
LH: loop header
LB: loop body
LE: loop exit
PB: predicated region body
PF: predicated region fallthrough
CT: control target
= control target key end

     0   :  { %10 = vsyncpa [#allocation3], 0  ;;  %s484_s0 = inlined_call_operand.hbm [shape: f32[8,32], index: 0, kind: input, shape index: {}]   ;;  %s485_s1 = inlined_call_operand.vmem [shape: bf16[32,128], index: 1, kind: input, shape index: {}]   ;;  %s486_s2 = inlined_call_operand.vmem [shape: f32[1,128], index: 2, kind: input, shape index: {}]   ;;  %s487_s3 = inlined_call_operand.hbm [shape: bf16[128,128], index: 3, kind: input, shape index: {}]   ;;  %s488_s4 = inlined_call_operand.vmem [shape: f32[1,128], index: 4, kind: input, shape index: {}]   ;;  %s489_s5 = inlined_call_operand.hbm [shape: bf16[8,128], index: 5, kind: output, shape index: {}]  }
   0x1   :  { %11 = vsyncpa [#allocation6], 0 }
   0x2   :  { %12 = vsyncpa [#allocation4], 0  ;;  %s392_s18 = smov [#allocation2]   ;;  %s393_s20 = smov [#allocation5]  }
   0x3   :  { %s19_s19 = sshll.u32 %s392_s18, 4  ;;  %s32_s21 = sshll.u32 %s393_s20, 4  ;;  %s20_s19 = int_to_ptr.vmem [resolvable:$true] %s19_s19  ;;  %s429_s21 = int_to_ptr.vmem [resolvable:$true] %s32_s21 }
   0x4   :  { %s320_s24 = scalar_lea.hbm %s484_s0, 128 }
   0x5   :  { %p321_p0 = scmp.ne.s32.totalorder %s484_s0, %s320_s24  ;;  %p324_p1 = scmp.lt.u32.totalorder %s320_s24, %s484_s0 }
   0x7   :  { %p326_p2 = pnand %p324_p1, %p321_p0 }
   0x9   :  { %329 = shalt.err (!%p326_p2)
}
   0xa   :  { %s330_s29 = scalar_lea.vmem %s20_s19, 128  ;;  %p335_p4 = scmp.lt.s32.totalorder %s20_s19, %s20_s19 }
   0xb   :  { %p331_p3 = scmp.ne.s32.totalorder %s20_s19, %s330_s29  ;;  %p336_p5 = scmp.lt.s32.totalorder %s330_s29, %s330_s29 }
   0xd   :  { %p337_p6 = por %p336_p5, %p335_p4 }
   0xf   :  { %p338_p7 = pnand %p337_p6, %p331_p3 }
  0x11   :  { %341 = shalt.err (!%p338_p7)
}
  0x12   :  { %22 = dma.hbm_to_vmem [thread:$0]  %s484_s0, 128, %s20_s19, [#allocation3]  }
  0x13   :  { %s342_s9 = scalar_lea.hbm %s487_s3, 1024 }
  0x14   :  { %p343_p8 = scmp.ne.s32.totalorder %s487_s3, %s342_s9  ;;  %p346_p9 = scmp.lt.u32.totalorder %s342_s9, %s487_s3 }
  0x16   :  { %p348_p10 = pnand %p346_p9, %p343_p8 }
  0x18   :  { %351 = shalt.err (!%p348_p10)
}
  0x19   :  { %s352_s14 = scalar_lea.vmem %s429_s21, 1024  ;;  %p357_p12 = scmp.lt.s32.totalorder %s429_s21, %s429_s21 }
  0x1a   :  { %p353_p11 = scmp.ne.s32.totalorder %s429_s21, %s352_s14  ;;  %p358_p13 = scmp.lt.s32.totalorder %s352_s14, %s352_s14 }
  0x1c   :  { %p359_p0 = por %p358_p13, %p357_p12 }
  0x1e   :  { %p360_p1 = pnand %p359_p0, %p353_p11 }
  0x20   :  { %363 = shalt.err (!%p360_p1)
}
  0x21   :  { %s394_s0 = smov 64   ;;  %s395_s15 = smov 4  }
  0x22   :  { %38 = dma.hbm_to_vmem [thread:$0]  %s487_s3, 1024, %s429_s21, [#allocation6], %s394_s0, %s394_s0, %s395_s15  }
  0x23   :  { %386 = dma.done.wait [#allocation3], 128  }
  0x24   :  { %387 = vsyncadd [#allocation3], 4294967168 }
  0x25   :  { %388 = dma.done.wait [#allocation6], 1024  }
  0x26   :  { %389 = vsyncadd [#allocation6], 4294966272  ;;  %v396_v0 = vmov 0.0   ;;  %vm397_vm0 = vmmov 0   ;;  %v310_v1 = vld [vmem:[%s485_s1] sm:$0xff]   ;;  %v311_v2 = vld [vmem:[%s485_s1 + $0x8] sm:$0xff]  }
  0x27   :  { %275 = vmatprep.subr.bf16.mxu0 %v396_v0  ;;  %279 = vmatprep.mubr.msk.bf16.mxu0 %vm397_vm0, %v396_v0  ;;  %v48_v3 = vld [vmem:[#allocation2] sm:$0xff]  ;;  %v312_v4 = vld [vmem:[#allocation5] sm:$0xff]   ;;  %v313_v6 = vld [vmem:[#allocation5 + $0x8] sm:$0xff]   ;;  %vm73_vm1 = vcmask 261120   ;;  %s398_s24 = smov [#allocation7]  }
  0x28   :  { %283 = vmatprep.subr.bf16.mxu1 %v396_v0  ;;  %299 = vmatprep.mubr.msk.bf16.mxu1 %vm397_vm0, %v396_v0  ;;  %v49_v5 = vpack.c.bf16 %v48_v3, %v48_v3  ;;  %v314_v7 = vld [vmem:[#allocation5 + $0x10] sm:$0xff]   ;;  %v315_v8 = vld [vmem:[#allocation5 + $0x18] sm:$0xff]   ;;  %v316_v9 = vld [vmem:[#allocation5 + $0x20] sm:$0xff]   ;;  %s240_s25 = sshll.u32 %s398_s24, 4  ;;  %s241_s25 = int_to_ptr.vmem [resolvable:$true] %s240_s25 }
  0x29   :  { %276 = vmatpush3.bf16.msra.mxu0 %v310_v1  ;;  %284 = vmatpush3.bf16.msra.mxu1 %v312_v4  ;;  %v317_v10 = vld [vmem:[#allocation5 + $0x28] sm:$0xff]   ;;  %v318_v11 = vld [vmem:[#allocation5 + $0x30] sm:$0xff]   ;;  %v319_v12 = vld [vmem:[#allocation5 + $0x38] sm:$0xff]   ;;  %p369_p3 = scmp.lt.s32.totalorder %s241_s25, %s241_s25 }
  0x2a   :  { %277 = vmatprep.subr.bf16.mxu0 %v396_v0  ;;  %285 = vmatprep.subr.bf16.mxu1 %v396_v0  ;;  %v250_v13 = vld [vmem:[%s486_s2] ss:$0 sm:$0xff]  ;;  %s364_s2 = scalar_lea.vmem %s241_s25, 64 }
  0x2b   :  { %v254_v22 = vld [vmem:[%s488_s4] ss:$0 sm:$0xff]  ;;  %p365_p2 = scmp.ne.s32.totalorder %s241_s25, %s364_s2  ;;  %p370_p4 = scmp.lt.s32.totalorder %s364_s2, %s364_s2 }
  0x2d   :  { %278 = vmatpush3.bf16.msra.mxu0 %v311_v2  ;;  %286 = vmatpush3.bf16.msra.mxu1 %v313_v6  ;;  %p371_p5 = por %p370_p4, %p369_p3 }
  0x2e   :  { %287 = vmatprep.subr.bf16.mxu1 %v396_v0 }
  0x2f   :  { %p372_p6 = pnand %p371_p5, %p365_p2 }
  0x30   :  { %280 = vmatmul.mubr.msk.bf16.vlgmr.msra.gmra.mrb[0].mxu0 %vm73_vm1, %v49_v5 }
  0x31   :  { %288 = vmatpush3.bf16.msra.mxu1 %v314_v7 }
  0x32   :  { %289 = vmatprep.subr.bf16.mxu1 %v396_v0 }
  0x35   :  { %290 = vmatpush3.bf16.msra.mxu1 %v315_v8 }
  0x36   :  { %291 = vmatprep.subr.bf16.mxu1 %v396_v0 }
  0x39   :  { %292 = vmatpush3.bf16.msra.mxu1 %v316_v9 }
  0x3a   :  { %293 = vmatprep.subr.bf16.mxu1 %v396_v0 }
  0x3d   :  { %294 = vmatpush3.bf16.msra.mxu1 %v317_v10 }
  0x3e   :  { %295 = vmatprep.subr.bf16.mxu1 %v396_v0 }
  0x41   :  { %296 = vmatpush3.bf16.msra.mxu1 %v318_v11 }
  0x42   :  { %297 = vmatprep.subr.bf16.mxu1 %v396_v0 }
  0x45   :  { %298 = vmatpush3.bf16.msra.mxu1 %v319_v12 }
 0x103   :  { %v111_v14 = vpop.f32.mrb[0].mxu0 }
 0x104   :  { %v112_v15 = vadd.f32 %v250_v13, %v111_v14  ;;  %v281_v16 = vpop.f32.mrb[1].mxu0 }
 0x105   :  { %v114_v17 = vpop.f32.mrb[2].mxu0 }
 0x106   :  { %vm117_vm2 = vcmp.gt.f32.partialorder %v112_v15, 0.0  ;;  %v118_v18 = vmul.f32 0.01, %v112_v15  ;;  %v282_v19 = vpop.f32.mrb[3].mxu0 }
 0x108   :  { %v119_v20 = vsel %vm117_vm2, %v112_v15, %v118_v18 }
 0x109   :  { %v120_v21 = vpack.c.bf16 %v119_v20, %v119_v20 }
 0x10b   :  { %300 = vmatmul.mubr.bf16.vlgmr.msra.gmra.mrb[0].mxu1 %v120_v21 }
 0x1de   :  { %v226_v23 = vpop.f32.mrb[0].mxu1 }
 0x1df   :  { %v227_v24 = vadd.f32 %v254_v22, %v226_v23  ;;  %v301_v25 = vpop.f32.mrb[1].mxu1 }
 0x1e0   :  { %v229_v26 = vpop.f32.mrb[2].mxu1 }
 0x1e1   :  { %v232_v27 = vpack.c.bf16 %v227_v24, %v227_v24  ;;  %v302_v28 = vpop.f32.mrb[3].mxu1 }
 0x1e3   :  { %233 = vst [vmem:[#allocation7] sm:$0xf] %v232_v27 }
 0x1e4   :  { %375 = shalt.err (!%p372_p6)
}
 0x1e5   :  { %s376_s4 = scalar_lea.hbm %s489_s5, 64 }
 0x1e6   :  { %p377_p7 = scmp.ne.s32.totalorder %s489_s5, %s376_s4  ;;  %p380_p8 = scmp.lt.u32.totalorder %s376_s4, %s489_s5 }
 0x1e8   :  { %p382_p9 = pnand %p380_p8, %p377_p7 }
 0x1ea   :  { %385 = shalt.err (!%p382_p9)
}
 0x1eb   :  { %243 = dma.vmem_to_hbm [thread:$0]  %s241_s25, 64, %s489_s5, [#allocation4]  }
 0x1ec   :  { %390 = dma.done.wait [#allocation4], 64  }
 0x1ed   :  { %391 = vsyncadd [#allocation4], 4294967232 }
 0x1ee   :  { %247 = vsyncpa [#allocation3], 1 }
 0x1ef   :  { %248 = vsyncpa [#allocation6], 1 }
 0x1f0   :  { %249 = vsyncpa [#allocation4], 1 }

</bundles_post_ra>
